<compile_context>
chip_gen: v7x
topology: tpu7x:2x2x1
jax: 0.10.0
libtpu: 0.0.40
codegen_flags: <defaults>
</compile_context>

<pallas_src>
import functools

import jax
import jax.numpy as jnp
from jax.experimental import pallas as pl
from jax.experimental.pallas import tpu as pltpu

_LANE = 128      # lane width: last dim of every block is a multiple of this
_SUBLANE = 8     # f32 sublane count: batch tiles are multiples of this


def _round_up(x: int, m: int) -> int:
    return (x + m - 1) // m * m


def _cdiv(a: int, b: int) -> int:
    return (a + b - 1) // b


# --------------------------------------------------------------------------- #
# Fused kernel: the whole network for one batch tile, activations never leave
# VMEM.
# --------------------------------------------------------------------------- #
def _fcnet_kernel(*refs, n_layers: int):
    # refs = (x_ref, w0_ref, b0_ref, ..., w{L-1}_ref, b{L-1}_ref, o_ref)
    x_ref = refs[0]
    o_ref = refs[-1]
    wb = refs[1:-1]

    h = x_ref[...]                                    # [TB, F0_pad] bf16
    for i in range(n_layers):
        w = wb[2 * i][...]                            # [Fi_pad, Fo_pad] bf16
        b = wb[2 * i + 1][...]                        # [1,  Fo_pad]     f32
        # bf16 x bf16 -> f32 on the MXU (full rate on v5e/v6e/v7x).
        y = jnp.dot(h, w, preferred_element_type=jnp.float32) + b
        if i < n_layers - 1:
            # ELU (alpha=1.0, torch.nn.ELU default) in f32.  Clamp the exp
            # argument so the discarded jnp.where branch never produces inf.
            y = jnp.where(y > 0, y, jnp.exp(jnp.minimum(y, 0.0)) - 1.0)
            h = y.astype(jnp.bfloat16)                # downcast only at next dot input
        else:
            h = y                                     # final Linear: no activation
    o_ref[...] = h.astype(o_ref.dtype)


# --------------------------------------------------------------------------- #
# Parameter preparation (do ONCE, outside the forward path).
# --------------------------------------------------------------------------- #
def prepare_fcnet_params(params, *, lane: int = _LANE):
    """Pad every (W [in,out], b [1,out]) to lane-dense multiples of 128 and
    cast W -> bf16 (b stays f32: it is added to the f32 dot output).

    Returns (padded_wb_tuple, f_in, f_out)."""
    padded_wb = []
    for w, b in params:
        ip = _round_up(w.shape[0], lane)
        op = _round_up(w.shape[1], lane)
        w_p = jnp.pad(w, ((0, ip - w.shape[0]), (0, op - w.shape[1])))
        b_p = jnp.pad(b, ((0, 0), (0, op - b.shape[1])))
        padded_wb.append(w_p.astype(jnp.bfloat16))
        padded_wb.append(b_p.astype(jnp.float32))
    f_in = params[0][0].shape[0]
    f_out = params[-1][0].shape[1]
    return tuple(padded_wb), f_in, f_out


# --------------------------------------------------------------------------- #
# Forward
# --------------------------------------------------------------------------- #
def _fcnet_forward_impl(x, prepared, *, max_batch_tile: int,
                        single_buffer_weights: bool):
    padded_wb, f_in, f_out = prepared
    n_layers = len(padded_wb) // 2
    f_in_pad = padded_wb[0].shape[0]
    f_out_pad = padded_wb[-2].shape[1]

    B = x.shape[0]
    assert x.shape[1] == f_in, (x.shape, f_in)

    # ---- batch tiling -------------------------------------------------------
    # Even tiles (no ~tb of junk rows), >=2 tiles whenever the batch allows so
    # v7x's second TensorCore gets work on the "parallel" axis, tiles capped at
    # max_batch_tile (512 by default: big tiles amortize the ~0.35us/step cost
    # and fill the 256-row MXU on v6e/v7x for large batches).
    b8 = _round_up(B, _SUBLANE)
    n_tiles = _cdiv(b8, max_batch_tile)
    if b8 >= 2 * _SUBLANE:
        n_tiles = max(n_tiles, 2)
    tb = _round_up(_cdiv(b8, n_tiles), _SUBLANE)
    n_tiles = _cdiv(b8, tb)
    b_pad = tb * n_tiles

    x_p = jnp.pad(x, ((0, b_pad - B), (0, f_in_pad - f_in))).astype(jnp.bfloat16)

    # ---- BlockSpecs ---------------------------------------------------------
    in_specs = [pl.BlockSpec((tb, f_in_pad), lambda i: (i, 0))]
    for li in range(n_layers):
        w_p = padded_wb[2 * li]
        b_p = padded_wb[2 * li + 1]
        # Weights/biases are grid-invariant (same block every step): keep them
        # resident in VMEM and single-buffered (double-buffering buys nothing).
        if single_buffer_weights:
            in_specs.append(pl.BlockSpec(w_p.shape, lambda i: (0, 0),
                                         pipeline_mode=pl.Buffered(1)))
            in_specs.append(pl.BlockSpec(b_p.shape, lambda i: (0, 0),
                                         pipeline_mode=pl.Buffered(1)))
        else:
            in_specs.append(pl.BlockSpec(w_p.shape, lambda i: (0, 0)))
            in_specs.append(pl.BlockSpec(b_p.shape, lambda i: (0, 0)))

    # ---- explicit VMEM budget ----------------------------------------------
    wbuf = 1 if single_buffer_weights else 2
    w_bytes = sum(int(padded_wb[2 * i].size) * 2 for i in range(n_layers))        # bf16
    bias_bytes = sum(int(padded_wb[2 * i + 1].size) * 4 for i in range(n_layers)) # f32
    max_f_pad = max([f_in_pad] + [padded_wb[2 * i].shape[1] for i in range(n_layers)])
    vmem_bytes = (2 * tb * f_in_pad * 2            # x tile, double-buffered bf16
                  + 2 * tb * f_out_pad * 4         # out tile, double-buffered f32
                  + wbuf * (w_bytes + bias_bytes)  # resident weights
                  + 4 * tb * max_f_pad * 4)        # intermediates / headroom
    vmem_limit = int(min(max(2 * vmem_bytes, 8 << 20), 64 << 20))
    # TODO(synk): nets whose resident weights exceed ~48 MiB (v7x has 64 MiB of
    # VMEM) should tile the contraction dim (extra "arbitrary" grid axis + f32
    # accumulator) or stream weights per layer with pltpu.emit_pipeline instead
    # of keeping every layer resident.
    # TODO(synk): optional v7x inference path: fp8 weights (MXU-native) with
    # f32 accumulation would halve weight DMA/VMEM again.

    kernel = functools.partial(_fcnet_kernel, n_layers=n_layers)
    out_p = pl.pallas_call(
        kernel,
        out_shape=jax.ShapeDtypeStruct((b_pad, f_out_pad), jnp.float32),
        grid=(n_tiles,),
        in_specs=in_specs,
        out_specs=pl.BlockSpec((tb, f_out_pad), lambda i: (i, 0)),
        compiler_params=pltpu.CompilerParams(
            dimension_semantics=("parallel",),   # batch axis: megacore-splittable
            vmem_limit_bytes=vmem_limit),
    )(x_p, *padded_wb)

    return out_p[:B, :f_out]


def fcnet_forward(x, prepared, *, max_batch_tile: int = 512):
    """FCNet.forward: Linear+ELU for all but the last layer, final Linear plain.

    `prepared` comes from prepare_fcnet_params (padding/casting hoisted out of
    the per-call path).  The whole network runs in one fused pallas_call.
    """
    try:
        return _fcnet_forward_impl(x, prepared, max_batch_tile=max_batch_tile,
                                   single_buffer_weights=True)
    except Exception:
        # If this jax/libtpu build rejects pl.Buffered(1) on grid-invariant
        # blocks, fall back to default (double-buffered) weight specs; this
        # only costs some extra weight VMEM, semantics are identical.
        return _fcnet_forward_impl(x, prepared, max_batch_tile=max_batch_tile,
                                   single_buffer_weights=False)


# --------------------------------------------------------------------------- #
# Init + pure-JAX reference (f32) for correctness checking.
# --------------------------------------------------------------------------- #
def init_fcnet_params(key, n_nodes):
    """Deterministic init mirroring nn.Linear's uniform(-k, k), k=1/sqrt(in)."""
    params = []
    for idx in range(len(n_nodes) - 1):
        fan_in, fan_out = n_nodes[idx], n_nodes[idx + 1]
        key, kw, kb = jax.random.split(key, 3)
        bound = 1.0 / jnp.sqrt(jnp.float32(fan_in))
        # weight stored [in, out] (transposed vs. PyTorch's [out, in])
        w = jax.random.uniform(kw, (fan_in, fan_out), jnp.float32, -bound, bound)
        b = jax.random.uniform(kb, (1, fan_out), jnp.float32, -bound, bound)
        params.append((w, b))
    return params


def fcnet_reference(x, params):
    h = x
    n_layers = len(params)
    for i, (w, b) in enumerate(params):
        h = h @ w + b
        if i < n_layers - 1:
            h = jnp.where(h > 0, h, jnp.exp(jnp.minimum(h, 0.0)) - 1.0)
    return h


if __name__ == "__main__":
    key = jax.random.PRNGKey(0)
    n_nodes = [32, 64, 48, 16]   # FCNet([32, 64, 48, 16]): 2x (Linear+ELU) + final Linear
    kx, kx2, kp = jax.random.split(key, 3)
    params = init_fcnet_params(kp, n_nodes)

    # Pad + bf16-cast the weights ONCE (hoisted out of the forward path).
    prepared = prepare_fcnet_params(params)

    # bf16 matmul inputs with f32 accumulation => loosened tolerance vs the
    # pure-f32 reference.
    ATOL = RTOL = 3e-2

    # Case 1: small batch (single tile).
    batch = 8
    x = jax.random.normal(kx, (batch, n_nodes[0]), dtype=jnp.float32)
    out = fcnet_forward(x, prepared)
    jax.block_until_ready(out)
    assert out.shape == (batch, n_nodes[-1])
    ref = fcnet_reference(x, params)
    assert jnp.allclose(out, ref, atol=ATOL, rtol=RTOL), (
        f"max abs err {jnp.max(jnp.abs(out - ref))}")

    # Case 2: batch that exercises multi-tile grid + row padding.
    batch2 = 40
    x2 = jax.random.normal(kx2, (batch2, n_nodes[0]), dtype=jnp.float32)
    out2 = fcnet_forward(x2, prepared)
    jax.block_until_ready(out2)
    assert out2.shape == (batch2, n_nodes[-1])
    ref2 = fcnet_reference(x2, params)
    assert jnp.allclose(out2, ref2, atol=ATOL, rtol=RTOL), (
        f"max abs err {jnp.max(jnp.abs(out2 - ref2))}")

    print("KERNEL_OK")
</pallas_src>

<mosaic_0001>
module attributes {stable_mosaic.version = 11 : i64} {
  func.func @_fcnet_kernel(%arg0: i32, %arg1: memref<8x128xbf16, #tpu.memory_space<vmem>>, %arg2: memref<128x128xbf16, #tpu.memory_space<vmem>>, %arg3: memref<1x128xf32, #tpu.memory_space<vmem>>, %arg4: memref<128x128xbf16, #tpu.memory_space<vmem>>, %arg5: memref<1x128xf32, #tpu.memory_space<vmem>>, %arg6: memref<128x128xbf16, #tpu.memory_space<vmem>>, %arg7: memref<1x128xf32, #tpu.memory_space<vmem>>, %arg8: memref<8x128xf32, #tpu.memory_space<vmem>>) attributes {dimension_semantics = [#tpu.dimension_semantics<parallel>], iteration_bounds = array<i64: 1>, scalar_prefetch = 0 : i64, scratch_operands = 0 : i64, tpu.core_type = #tpu.core_type<tc>, window_params = [{transform_indices = @transform_0, window_bounds = array<i64: 8, 128>}, {pipeline_mode = #tpu.pipeline_mode<synchronous>, transform_indices = @transform_1, window_bounds = array<i64: 128, 128>}, {pipeline_mode = #tpu.pipeline_mode<synchronous>, transform_indices = @transform_2, window_bounds = array<i64: 1, 128>}, {pipeline_mode = #tpu.pipeline_mode<synchronous>, transform_indices = @transform_3, window_bounds = array<i64: 128, 128>}, {pipeline_mode = #tpu.pipeline_mode<synchronous>, transform_indices = @transform_4, window_bounds = array<i64: 1, 128>}, {pipeline_mode = #tpu.pipeline_mode<synchronous>, transform_indices = @transform_5, window_bounds = array<i64: 128, 128>}, {pipeline_mode = #tpu.pipeline_mode<synchronous>, transform_indices = @transform_6, window_bounds = array<i64: 1, 128>}, {transform_indices = @transform_7, window_bounds = array<i64: 8, 128>}]} {
    %c0 = arith.constant 0 : index
    %c0_0 = arith.constant 0 : index
    %0 = vector.load %arg1[%c0, %c0_0] : memref<8x128xbf16, #tpu.memory_space<vmem>>, vector<8x128xbf16>
    %c0_1 = arith.constant 0 : index
    %c0_2 = arith.constant 0 : index
    %1 = vector.load %arg2[%c0_1, %c0_2] : memref<128x128xbf16, #tpu.memory_space<vmem>>, vector<128x128xbf16>
    %c0_3 = arith.constant 0 : index
    %c0_4 = arith.constant 0 : index
    %2 = vector.load %arg3[%c0_3, %c0_4] : memref<1x128xf32, #tpu.memory_space<vmem>>, vector<1x128xf32>
    %cst = arith.constant dense<0.000000e+00> : vector<8x128xf32>
    %3 = tpu.matmul %0, %1, %cst {dimension_numbers = #tpu.dot_dimension_numbers<[1], [0], [0], [1], [0, 0, 1, 1], [], []>} : vector<8x128xbf16>, vector<128x128xbf16>, vector<8x128xf32> -> vector<8x128xf32>
    %4 = vector.broadcast %2 : vector<1x128xf32> to vector<8x128xf32>
    %5 = arith.addf %3, %4 : vector<8x128xf32>
    %cst_5 = arith.constant 0.000000e+00 : f32
    %6 = vector.broadcast %cst_5 : f32 to vector<8x128xf32>
    %7 = arith.cmpf ogt, %5, %6 : vector<8x128xf32>
    %cst_6 = arith.constant 0.000000e+00 : f32
    %8 = vector.broadcast %cst_6 : f32 to vector<8x128xf32>
    %9 = arith.minimumf %5, %8 : vector<8x128xf32>
    %10 = math.exp %9 : vector<8x128xf32>
    %cst_7 = arith.constant 1.000000e+00 : f32
    %11 = vector.broadcast %cst_7 : f32 to vector<8x128xf32>
    %12 = arith.subf %10, %11 : vector<8x128xf32>
    %13 = arith.select %7, %5, %12 : vector<8x128xi1>, vector<8x128xf32>
    %14 = arith.truncf %13 : vector<8x128xf32> to vector<8x128xbf16>
    %c0_8 = arith.constant 0 : index
    %c0_9 = arith.constant 0 : index
    %15 = vector.load %arg4[%c0_8, %c0_9] : memref<128x128xbf16, #tpu.memory_space<vmem>>, vector<128x128xbf16>
    %c0_10 = arith.constant 0 : index
    %c0_11 = arith.constant 0 : index
    %16 = vector.load %arg5[%c0_10, %c0_11] : memref<1x128xf32, #tpu.memory_space<vmem>>, vector<1x128xf32>
    %cst_12 = arith.constant dense<0.000000e+00> : vector<8x128xf32>
    %17 = tpu.matmul %14, %15, %cst_12 {dimension_numbers = #tpu.dot_dimension_numbers<[1], [0], [0], [1], [0, 0, 1, 1], [], []>} : vector<8x128xbf16>, vector<128x128xbf16>, vector<8x128xf32> -> vector<8x128xf32>
    %18 = vector.broadcast %16 : vector<1x128xf32> to vector<8x128xf32>
    %19 = arith.addf %17, %18 : vector<8x128xf32>
    %cst_13 = arith.constant 0.000000e+00 : f32
    %20 = vector.broadcast %cst_13 : f32 to vector<8x128xf32>
    %21 = arith.cmpf ogt, %19, %20 : vector<8x128xf32>
    %cst_14 = arith.constant 0.000000e+00 : f32
    %22 = vector.broadcast %cst_14 : f32 to vector<8x128xf32>
    %23 = arith.minimumf %19, %22 : vector<8x128xf32>
    %24 = math.exp %23 : vector<8x128xf32>
    %cst_15 = arith.constant 1.000000e+00 : f32
    %25 = vector.broadcast %cst_15 : f32 to vector<8x128xf32>
    %26 = arith.subf %24, %25 : vector<8x128xf32>
    %27 = arith.select %21, %19, %26 : vector<8x128xi1>, vector<8x128xf32>
    %28 = arith.truncf %27 : vector<8x128xf32> to vector<8x128xbf16>
    %c0_16 = arith.constant 0 : index
    %c0_17 = arith.constant 0 : index
    %29 = vector.load %arg6[%c0_16, %c0_17] : memref<128x128xbf16, #tpu.memory_space<vmem>>, vector<128x128xbf16>
    %c0_18 = arith.constant 0 : index
    %c0_19 = arith.constant 0 : index
    %30 = vector.load %arg7[%c0_18, %c0_19] : memref<1x128xf32, #tpu.memory_space<vmem>>, vector<1x128xf32>
    %cst_20 = arith.constant dense<0.000000e+00> : vector<8x128xf32>
    %31 = tpu.matmul %28, %29, %cst_20 {dimension_numbers = #tpu.dot_dimension_numbers<[1], [0], [0], [1], [0, 0, 1, 1], [], []>} : vector<8x128xbf16>, vector<128x128xbf16>, vector<8x128xf32> -> vector<8x128xf32>
    %32 = vector.broadcast %30 : vector<1x128xf32> to vector<8x128xf32>
    %33 = arith.addf %31, %32 : vector<8x128xf32>
    %c0_21 = arith.constant 0 : index
    %c0_22 = arith.constant 0 : index
    %34 = vector.load %arg8[%c0_21, %c0_22] : memref<8x128xf32, #tpu.memory_space<vmem>>, vector<8x128xf32>
    tpu.vector_store %arg8[%c0_21, %c0_22], %33 {strides = array<i32>} : memref<8x128xf32, #tpu.memory_space<vmem>>, vector<8x128xf32>,
    return
  }
  func.func @transform_0(%arg0: i32) -> (i32, i32) {
    %c0_i32 = arith.constant 0 : i32
    %c0_i32_0 = arith.constant 0 : i32
    return %arg0, %c0_i32 : i32, i32
  }
  func.func @transform_1(%arg0: i32) -> (i32, i32) {
    %c0_i32 = arith.constant 0 : i32
    %c0_i32_0 = arith.constant 0 : i32
    %c0_i32_1 = arith.constant 0 : i32
    return %c0_i32, %c0_i32_0 : i32, i32
  }
  func.func @transform_2(%arg0: i32) -> (i32, i32) {
    %c0_i32 = arith.constant 0 : i32
    %c0_i32_0 = arith.constant 0 : i32
    %c0_i32_1 = arith.constant 0 : i32
    return %c0_i32, %c0_i32_0 : i32, i32
  }
  func.func @transform_3(%arg0: i32) -> (i32, i32) {
    %c0_i32 = arith.constant 0 : i32
    %c0_i32_0 = arith.constant 0 : i32
    %c0_i32_1 = arith.constant 0 : i32
    return %c0_i32, %c0_i32_0 : i32, i32
  }
  func.func @transform_4(%arg0: i32) -> (i32, i32) {
    %c0_i32 = arith.constant 0 : i32
    %c0_i32_0 = arith.constant 0 : i32
    %c0_i32_1 = arith.constant 0 : i32
    return %c0_i32, %c0_i32_0 : i32, i32
  }
  func.func @transform_5(%arg0: i32) -> (i32, i32) {
    %c0_i32 = arith.constant 0 : i32
    %c0_i32_0 = arith.constant 0 : i32
    %c0_i32_1 = arith.constant 0 : i32
    return %c0_i32, %c0_i32_0 : i32, i32
  }
  func.func @transform_6(%arg0: i32) -> (i32, i32) {
    %c0_i32 = arith.constant 0 : i32
    %c0_i32_0 = arith.constant 0 : i32
    %c0_i32_1 = arith.constant 0 : i32
    return %c0_i32, %c0_i32_0 : i32, i32
  }
  func.func @transform_7(%arg0: i32) -> (i32, i32) {
    %c0_i32 = arith.constant 0 : i32
    %c0_i32_0 = arith.constant 0 : i32
    return %arg0, %c0_i32 : i32, i32
  }
}

module attributes {stable_mosaic.version = 11 : i64} {
  func.func @_fcnet_kernel(%arg0: i32, %arg1: memref<8x128xbf16, #tpu.memory_space<vmem>>, %arg2: memref<128x128xbf16, #tpu.memory_space<vmem>>, %arg3: memref<1x128xf32, #tpu.memory_space<vmem>>, %arg4: memref<128x128xbf16, #tpu.memory_space<vmem>>, %arg5: memref<1x128xf32, #tpu.memory_space<vmem>>, %arg6: memref<128x128xbf16, #tpu.memory_space<vmem>>, %arg7: memref<1x128xf32, #tpu.memory_space<vmem>>, %arg8: memref<8x128xf32, #tpu.memory_space<vmem>>) attributes {dimension_semantics = [#tpu.dimension_semantics<parallel>], iteration_bounds = array<i64: 1>, scalar_prefetch = 0 : i64, scratch_operands = 0 : i64, tpu.core_type = #tpu.core_type<tc>, window_params = [{transform_indices = @transform_0, window_bounds = array<i64: 8, 128>}, {pipeline_mode = #tpu.pipeline_mode<synchronous>, transform_indices = @transform_1, window_bounds = array<i64: 128, 128>}, {pipeline_mode = #tpu.pipeline_mode<synchronous>, transform_indices = @transform_2, window_bounds = array<i64: 1, 128>}, {pipeline_mode = #tpu.pipeline_mode<synchronous>, transform_indices = @transform_3, window_bounds = array<i64: 128, 128>}, {pipeline_mode = #tpu.pipeline_mode<synchronous>, transform_indices = @transform_4, window_bounds = array<i64: 1, 128>}, {pipeline_mode = #tpu.pipeline_mode<synchronous>, transform_indices = @transform_5, window_bounds = array<i64: 128, 128>}, {pipeline_mode = #tpu.pipeline_mode<synchronous>, transform_indices = @transform_6, window_bounds = array<i64: 1, 128>}, {transform_indices = @transform_7, window_bounds = array<i64: 8, 128>}]} {
    %c0 = arith.constant 0 : index
    %c0_0 = arith.constant 0 : index
    %0 = vector.load %arg1[%c0, %c0_0] : memref<8x128xbf16, #tpu.memory_space<vmem>>, vector<8x128xbf16>
    %c0_1 = arith.constant 0 : index
    %c0_2 = arith.constant 0 : index
    %1 = vector.load %arg2[%c0_1, %c0_2] : memref<128x128xbf16, #tpu.memory_space<vmem>>, vector<128x128xbf16>
    %c0_3 = arith.constant 0 : index
    %c0_4 = arith.constant 0 : index
    %2 = vector.load %arg3[%c0_3, %c0_4] : memref<1x128xf32, #tpu.memory_space<vmem>>, vector<1x128xf32>
    %cst = arith.constant dense<0.000000e+00> : vector<8x128xf32>
    %3 = tpu.matmul %0, %1, %cst {dimension_numbers = #tpu.dot_dimension_numbers<[1], [0], [0], [1], [0, 0, 1, 1], [], []>} : vector<8x128xbf16>, vector<128x128xbf16>, vector<8x128xf32> -> vector<8x128xf32>
    %4 = vector.broadcast %2 : vector<1x128xf32> to vector<8x128xf32>
    %5 = arith.addf %3, %4 : vector<8x128xf32>
    %cst_5 = arith.constant 0.000000e+00 : f32
    %6 = vector.broadcast %cst_5 : f32 to vector<8x128xf32>
    %7 = arith.cmpf ogt, %5, %6 : vector<8x128xf32>
    %cst_6 = arith.constant 0.000000e+00 : f32
    %8 = vector.broadcast %cst_6 : f32 to vector<8x128xf32>
    %9 = arith.minimumf %5, %8 : vector<8x128xf32>
    %10 = math.exp %9 : vector<8x128xf32>
    %cst_7 = arith.constant 1.000000e+00 : f32
    %11 = vector.broadcast %cst_7 : f32 to vector<8x128xf32>
    %12 = arith.subf %10, %11 : vector<8x128xf32>
    %13 = arith.select %7, %5, %12 : vector<8x128xi1>, vector<8x128xf32>
    %14 = arith.truncf %13 : vector<8x128xf32> to vector<8x128xbf16>
    %c0_8 = arith.constant 0 : index
    %c0_9 = arith.constant 0 : index
    %15 = vector.load %arg4[%c0_8, %c0_9] : memref<128x128xbf16, #tpu.memory_space<vmem>>, vector<128x128xbf16>
    %c0_10 = arith.constant 0 : index
    %c0_11 = arith.constant 0 : index
    %16 = vector.load %arg5[%c0_10, %c0_11] : memref<1x128xf32, #tpu.memory_space<vmem>>, vector<1x128xf32>
    %cst_12 = arith.constant dense<0.000000e+00> : vector<8x128xf32>
    %17 = tpu.matmul %14, %15, %cst_12 {dimension_numbers = #tpu.dot_dimension_numbers<[1], [0], [0], [1], [0, 0, 1, 1], [], []>} : vector<8x128xbf16>, vector<128x128xbf16>, vector<8x128xf32> -> vector<8x128xf32>
    %18 = vector.broadcast %16 : vector<1x128xf32> to vector<8x128xf32>
    %19 = arith.addf %17, %18 : vector<8x128xf32>
    %cst_13 = arith.constant 0.000000e+00 : f32
    %20 = vector.broadcast %cst_13 : f32 to vector<8x128xf32>
    %21 = arith.cmpf ogt, %19, %20 : vector<8x128xf32>
    %cst_14 = arith.constant 0.000000e+00 : f32
    %22 = vector.broadcast %cst_14 : f32 to vector<8x128xf32>
    %23 = arith.minimumf %19, %22 : vector<8x128xf32>
    %24 = math.exp %23 : vector<8x128xf32>
    %cst_15 = arith.constant 1.000000e+00 : f32
    %25 = vector.broadcast %cst_15 : f32 to vector<8x128xf32>
    %26 = arith.subf %24, %25 : vector<8x128xf32>
    %27 = arith.select %21, %19, %26 : vector<8x128xi1>, vector<8x128xf32>
    %28 = arith.truncf %27 : vector<8x128xf32> to vector<8x128xbf16>
    %c0_16 = arith.constant 0 : index
    %c0_17 = arith.constant 0 : index
    %29 = vector.load %arg6[%c0_16, %c0_17] : memref<128x128xbf16, #tpu.memory_space<vmem>>, vector<128x128xbf16>
    %c0_18 = arith.constant 0 : index
    %c0_19 = arith.constant 0 : index
    %30 = vector.load %arg7[%c0_18, %c0_19] : memref<1x128xf32, #tpu.memory_space<vmem>>, vector<1x128xf32>
    %cst_20 = arith.constant dense<0.000000e+00> : vector<8x128xf32>
    %31 = tpu.matmul %28, %29, %cst_20 {dimension_numbers = #tpu.dot_dimension_numbers<[1], [0], [0], [1], [0, 0, 1, 1], [], []>} : vector<8x128xbf16>, vector<128x128xbf16>, vector<8x128xf32> -> vector<8x128xf32>
    %32 = vector.broadcast %30 : vector<1x128xf32> to vector<8x128xf32>
    %33 = arith.addf %31, %32 : vector<8x128xf32>
    %c0_21 = arith.constant 0 : index
    %c0_22 = arith.constant 0 : index
    %34 = vector.load %arg8[%c0_21, %c0_22] : memref<8x128xf32, #tpu.memory_space<vmem>>, vector<8x128xf32>
    tpu.vector_store %arg8[%c0_21, %c0_22], %33 {strides = array<i32>} : memref<8x128xf32, #tpu.memory_space<vmem>>, vector<8x128xf32>,
    return
  }
  func.func @transform_0(%arg0: i32) -> (i32, i32) {
    %c0_i32 = arith.constant 0 : i32
    %c0_i32_0 = arith.constant 0 : i32
    return %arg0, %c0_i32 : i32, i32
  }
  func.func @transform_1(%arg0: i32) -> (i32, i32) {
    %c0_i32 = arith.constant 0 : i32
    %c0_i32_0 = arith.constant 0 : i32
    %c0_i32_1 = arith.constant 0 : i32
    return %c0_i32, %c0_i32_0 : i32, i32
  }
  func.func @transform_2(%arg0: i32) -> (i32, i32) {
    %c0_i32 = arith.constant 0 : i32
    %c0_i32_0 = arith.constant 0 : i32
    %c0_i32_1 = arith.constant 0 : i32
    return %c0_i32, %c0_i32_0 : i32, i32
  }
  func.func @transform_3(%arg0: i32) -> (i32, i32) {
    %c0_i32 = arith.constant 0 : i32
    %c0_i32_0 = arith.constant 0 : i32
    %c0_i32_1 = arith.constant 0 : i32
    return %c0_i32, %c0_i32_0 : i32, i32
  }
  func.func @transform_4(%arg0: i32) -> (i32, i32) {
    %c0_i32 = arith.constant 0 : i32
    %c0_i32_0 = arith.constant 0 : i32
    %c0_i32_1 = arith.constant 0 : i32
    return %c0_i32, %c0_i32_0 : i32, i32
  }
  func.func @transform_5(%arg0: i32) -> (i32, i32) {
    %c0_i32 = arith.constant 0 : i32
    %c0_i32_0 = arith.constant 0 : i32
    %c0_i32_1 = arith.constant 0 : i32
    return %c0_i32, %c0_i32_0 : i32, i32
  }
  func.func @transform_6(%arg0: i32) -> (i32, i32) {
    %c0_i32 = arith.constant 0 : i32
    %c0_i32_0 = arith.constant 0 : i32
    %c0_i32_1 = arith.constant 0 : i32
    return %c0_i32, %c0_i32_0 : i32, i32
  }
  func.func @transform_7(%arg0: i32) -> (i32, i32) {
    %c0_i32 = arith.constant 0 : i32
    %c0_i32_0 = arith.constant 0 : i32
    return %arg0, %c0_i32 : i32, i32
  }
}

</mosaic_0001>

<bundles_post_ra>
// kernel: tpu_custom_call.1
= control target key start
LH: loop header
LB: loop body
LE: loop exit
PB: predicated region body
PF: predicated region fallthrough
CT: control target
= control target key end

     0   :  { %12 = vsyncpa [#allocation3], 0  ;;  %s875_s0 = inlined_call_operand.hbm [shape: bf16[8,128], index: 0, kind: input, shape index: {}]   ;;  %s876_s1 = inlined_call_operand.hbm [shape: bf16[128,128], index: 1, kind: input, shape index: {}]   ;;  %s877_s2 = inlined_call_operand.vmem [shape: f32[1,128], index: 2, kind: input, shape index: {}]   ;;  %s878_s3 = inlined_call_operand.hbm [shape: bf16[128,128], index: 3, kind: input, shape index: {}]   ;;  %s879_s4 = inlined_call_operand.vmem [shape: f32[1,128], index: 4, kind: input, shape index: {}]   ;;  %s880_s5 = inlined_call_operand.hbm [shape: bf16[128,128], index: 5, kind: input, shape index: {}]   ;;  %s881_s6 = inlined_call_operand.vmem [shape: f32[1,128], index: 6, kind: input, shape index: {}]   ;;  %s882_s7 = inlined_call_operand.hbm [shape: f32[8,128], index: 7, kind: output, shape index: {}]  }
   0x1   :  { %13 = vsyncpa [#allocation6], 0 }
   0x2   :  { %14 = vsyncpa [#allocation9], 0 }
   0x3   :  { %15 = vsyncpa [#allocation4], 0  ;;  %s718_s24 = smov [#allocation5]   ;;  %s600_s28 = scalar_lea.hbm %s876_s1, 1024 }
   0x4   :  { %s31_s25 = sshll.u32 %s718_s24, 4  ;;  %p601_p0 = scmp.ne.s32.totalorder %s876_s1, %s600_s28  ;;  %s32_s25 = int_to_ptr.vmem [resolvable:$true] %s31_s25 }
   0x5   :  { %p604_p1 = scmp.lt.u32.totalorder %s600_s28, %s876_s1 }
   0x7   :  { %p606_p2 = pnand %p604_p1, %p601_p0 }
   0x9   :  { %609 = shalt.err (!%p606_p2)
}
   0xa   :  { %s610_s10 = scalar_lea.vmem %s32_s25, 1024  ;;  %p615_p4 = scmp.lt.s32.totalorder %s32_s25, %s32_s25 }
   0xb   :  { %p611_p3 = scmp.ne.s32.totalorder %s32_s25, %s610_s10  ;;  %p616_p5 = scmp.lt.s32.totalorder %s610_s10, %s610_s10 }
   0xd   :  { %p617_p6 = por %p616_p5, %p615_p4 }
   0xf   :  { %p618_p7 = pnand %p617_p6, %p611_p3 }
  0x11   :  { %621 = shalt.err (!%p618_p7)
}
  0x12   :  { %s719_s11 = smov 64   ;;  %s720_s12 = smov 4  }
  0x13   :  { %37 = dma.hbm_to_vmem [thread:$0]  %s876_s1, 1024, %s32_s25, [#allocation6], %s719_s11, %s719_s11, %s720_s12  }
  0x14   :  { %s721_s15 = smov [#allocation2]   ;;  %s722_s17 = smov [#allocation7]  }
  0x15   :  { %s22_s16 = sshll.u32 %s721_s15, 4  ;;  %s45_s18 = sshll.u32 %s722_s17, 4  ;;  %s23_s16 = int_to_ptr.vmem [resolvable:$true] %s22_s16  ;;  %s46_s18 = int_to_ptr.vmem [resolvable:$true] %s45_s18 }
  0x16   :  { %s622_s21 = scalar_lea.hbm %s875_s0, 64 }
  0x17   :  { %p623_p8 = scmp.ne.s32.totalorder %s875_s0, %s622_s21  ;;  %p626_p9 = scmp.lt.u32.totalorder %s622_s21, %s875_s0 }
  0x19   :  { %p628_p10 = pnand %p626_p9, %p623_p8 }
  0x1b   :  { %631 = shalt.err (!%p628_p10)
}
  0x1c   :  { %s632_s1 = scalar_lea.vmem %s23_s16, 64  ;;  %p637_p12 = scmp.lt.s32.totalorder %s23_s16, %s23_s16 }
  0x1d   :  { %p633_p11 = scmp.ne.s32.totalorder %s23_s16, %s632_s1  ;;  %p638_p13 = scmp.lt.s32.totalorder %s632_s1, %s632_s1 }
  0x1f   :  { %p639_p0 = por %p638_p13, %p637_p12 }
  0x21   :  { %p640_p1 = pnand %p639_p0, %p633_p11 }
  0x23   :  { %643 = shalt.err (!%p640_p1)
}
  0x24   :  { %25 = dma.hbm_to_vmem [thread:$0]  %s875_s0, 64, %s23_s16, [#allocation3]  }
  0x25   :  { %s644_s30 = scalar_lea.hbm %s878_s3, 1024 }
  0x26   :  { %p645_p2 = scmp.ne.s32.totalorder %s878_s3, %s644_s30  ;;  %p648_p3 = scmp.lt.u32.totalorder %s644_s30, %s878_s3 }
  0x28   :  { %p650_p4 = pnand %p648_p3, %p645_p2 }
  0x2a   :  { %653 = shalt.err (!%p650_p4)
}
  0x2b   :  { %s654_s14 = scalar_lea.vmem %s46_s18, 1024  ;;  %p659_p6 = scmp.lt.s32.totalorder %s46_s18, %s46_s18 }
  0x2c   :  { %p655_p5 = scmp.ne.s32.totalorder %s46_s18, %s654_s14  ;;  %p660_p7 = scmp.lt.s32.totalorder %s654_s14, %s654_s14 }
  0x2e   :  { %p661_p8 = por %p660_p7, %p659_p6 }
  0x30   :  { %p662_p9 = pnand %p661_p8, %p655_p5 }
  0x32   :  { %665 = shalt.err (!%p662_p9)
}
  0x33   :  { %51 = dma.hbm_to_vmem [thread:$0]  %s878_s3, 1024, %s46_s18, [#allocation6], %s719_s11, %s719_s11, %s720_s12  }
  0x34   :  { %s723_s16 = smov [#allocation8]   ;;  %s666_s21 = scalar_lea.hbm %s880_s5, 1024 }
  0x35   :  { %s59_s17 = sshll.u32 %s723_s16, 4  ;;  %p667_p10 = scmp.ne.s32.totalorder %s880_s5, %s666_s21  ;;  %s60_s17 = int_to_ptr.vmem [resolvable:$true] %s59_s17 }
  0x36   :  { %p670_p11 = scmp.lt.u32.totalorder %s666_s21, %s880_s5 }
  0x38   :  { %p672_p12 = pnand %p670_p11, %p667_p10 }
  0x3a   :  { %675 = shalt.err (!%p672_p12)
}
  0x3b   :  { %s676_s1 = scalar_lea.vmem %s60_s17, 1024  ;;  %p681_p0 = scmp.lt.s32.totalorder %s60_s17, %s60_s17 }
  0x3c   :  { %p677_p13 = scmp.ne.s32.totalorder %s60_s17, %s676_s1  ;;  %p682_p1 = scmp.lt.s32.totalorder %s676_s1, %s676_s1 }
  0x3e   :  { %p683_p2 = por %p682_p1, %p681_p0 }
  0x40   :  { %p684_p3 = pnand %p683_p2, %p677_p13 }
  0x42   :  { %687 = shalt.err (!%p684_p3)
}
  0x43   :  { %65 = dma.hbm_to_vmem [thread:$0]  %s880_s5, 1024, %s60_s17, [#allocation9], %s719_s11, %s719_s11, %s720_s12  }
  0x44   :  { %710 = dma.done.wait [#allocation3], 64  }
  0x45   :  { %711 = vsyncadd [#allocation3], 4294967232 }
  0x46   :  { %712 = dma.done.wait [#allocation6], 2048  }
  0x47   :  { %713 = vsyncadd [#allocation6], 4294965248 }
  0x48   :  { %714 = dma.done.wait [#allocation9], 1024  }
  0x49   :  { %715 = vsyncadd [#allocation9], 4294966272  ;;  %v724_v0 = vmov 0.0   ;;  %vm725_vm0 = vmmov 0   ;;  %v572_v1 = vld [vmem:[#allocation5] sm:$0xff]   ;;  %v573_v2 = vld [vmem:[#allocation5 + $0x8] sm:$0xff]  }
  0x4a   :  { %503 = vmatprep.subr.bf16.mxu0 %v724_v0  ;;  %519 = vmatprep.mubr.msk.bf16.mxu0 %vm725_vm0, %v724_v0  ;;  %v574_v3 = vld [vmem:[#allocation5 + $0x10] sm:$0xff]   ;;  %v580_v4 = vld [vmem:[#allocation7] sm:$0xff]   ;;  %v575_v5 = vld [vmem:[#allocation5 + $0x18] sm:$0xff]   ;;  %s726_s28 = smov [#allocation10]  }
  0x4b   :  { %523 = vmatprep.subr.bf16.mxu1 %v724_v0  ;;  %539 = vmatprep.mubr.msk.bf16.mxu1 %vm725_vm0, %v724_v0  ;;  %v581_v6 = vld [vmem:[#allocation7 + $0x8] sm:$0xff]   ;;  %v576_v7 = vld [vmem:[#allocation5 + $0x20] sm:$0xff]   ;;  %v578_v9 = vld [vmem:[#allocation5 + $0x30] sm:$0xff]  }
  0x4c   :  { %504 = vmatpush3.bf16.msra.mxu0 %v572_v1  ;;  %524 = vmatpush3.bf16.msra.mxu1 %v580_v4  ;;  %v577_v8 = vld [vmem:[#allocation5 + $0x28] sm:$0xff]   ;;  %v579_v10 = vld [vmem:[#allocation5 + $0x38] sm:$0xff]   ;;  %v582_v12 = vld [vmem:[#allocation7 + $0x10] sm:$0xff]  }
  0x4d   :  { %505 = vmatprep.subr.bf16.mxu0 %v724_v0  ;;  %525 = vmatprep.subr.bf16.mxu1 %v724_v0  ;;  %v81_v11 = vld [vmem:[#allocation2] sm:$0xf]  ;;  %v584_v14 = vld [vmem:[#allocation7 + $0x20] sm:$0xff]   ;;  %v585_v15 = vld [vmem:[#allocation7 + $0x28] sm:$0xff]  }
  0x4e   :  { %v583_v13 = vld [vmem:[#allocation7 + $0x18] sm:$0xff]   ;;  %v586_v16 = vld [vmem:[#allocation7 + $0x30] sm:$0xff]   ;;  %v588_v18 = vld [vmem:[#allocation8] sm:$0xff]  }
  0x4f   :  { %v587_v17 = vld [vmem:[#allocation7 + $0x38] sm:$0xff]   ;;  %v589_v19 = vld [vmem:[#allocation8 + $0x8] sm:$0xff]   ;;  %v590_v32 = vld [vmem:[#allocation8 + $0x10] sm:$0xff]  }
  0x50   :  { %506 = vmatpush3.bf16.msra.mxu0 %v573_v2  ;;  %526 = vmatpush3.bf16.msra.mxu1 %v581_v6  ;;  %v447_v20 = vld [vmem:[%s877_s2] ss:$0 sm:$0xff]  ;;  %v592_v34 = vld [vmem:[#allocation8 + $0x20] sm:$0xff]   ;;  %v593_v35 = vld [vmem:[#allocation8 + $0x28] sm:$0xff]  }
  0x51   :  { %507 = vmatprep.subr.bf16.mxu0 %v724_v0  ;;  %527 = vmatprep.subr.bf16.mxu1 %v724_v0  ;;  %v591_v33 = vld [vmem:[#allocation8 + $0x18] sm:$0xff]   ;;  %v594_v36 = vld [vmem:[#allocation8 + $0x30] sm:$0xff]  }
  0x52   :  { %v595_v37 = vld [vmem:[#allocation8 + $0x38] sm:$0xff]  }
  0x53   :  { %v457_v38 = vld [vmem:[%s879_s4] ss:$0 sm:$0xff]  ;;  %s436_s4 = sshll.u32 %s726_s28, 4  ;;  %s437_s4 = int_to_ptr.vmem [resolvable:$true] %s436_s4 }
  0x54   :  { %508 = vmatpush3.bf16.msra.mxu0 %v574_v3  ;;  %528 = vmatpush3.bf16.msra.mxu1 %v582_v12  ;;  %v467_v50 = vld [vmem:[%s881_s6] ss:$0 sm:$0xff]  ;;  %s688_s29 = scalar_lea.vmem %s437_s4, 128  ;;  %p693_p5 = scmp.lt.s32.totalorder %s437_s4, %s437_s4 }
  0x55   :  { %509 = vmatprep.subr.bf16.mxu0 %v724_v0  ;;  %529 = vmatprep.subr.bf16.mxu1 %v724_v0  ;;  %p689_p4 = scmp.ne.s32.totalorder %s437_s4, %s688_s29  ;;  %p694_p6 = scmp.lt.s32.totalorder %s688_s29, %s688_s29 }
  0x57   :  { %p695_p7 = por %p694_p6, %p693_p5 }
  0x58   :  { %510 = vmatpush3.bf16.msra.mxu0 %v575_v5  ;;  %530 = vmatpush3.bf16.msra.mxu1 %v583_v13 }
  0x59   :  { %511 = vmatprep.subr.bf16.mxu0 %v724_v0  ;;  %531 = vmatprep.subr.bf16.mxu1 %v724_v0  ;;  %p696_p8 = pnand %p695_p7, %p689_p4 }
  0x5c   :  { %512 = vmatpush3.bf16.msra.mxu0 %v576_v7  ;;  %532 = vmatpush3.bf16.msra.mxu1 %v584_v14 }
  0x5d   :  { %513 = vmatprep.subr.bf16.mxu0 %v724_v0  ;;  %533 = vmatprep.subr.bf16.mxu1 %v724_v0 }
  0x60   :  { %514 = vmatpush3.bf16.msra.mxu0 %v577_v8  ;;  %534 = vmatpush3.bf16.msra.mxu1 %v585_v15 }
  0x61   :  { %515 = vmatprep.subr.bf16.mxu0 %v724_v0  ;;  %535 = vmatprep.subr.bf16.mxu1 %v724_v0 }
  0x64   :  { %516 = vmatpush3.bf16.msra.mxu0 %v578_v9  ;;  %536 = vmatpush3.bf16.msra.mxu1 %v586_v16 }
  0x65   :  { %517 = vmatprep.subr.bf16.mxu0 %v724_v0  ;;  %537 = vmatprep.subr.bf16.mxu1 %v724_v0 }
  0x68   :  { %518 = vmatpush3.bf16.msra.mxu0 %v579_v10  ;;  %538 = vmatpush3.bf16.msra.mxu1 %v587_v17 }
  0x69   :  { %543 = vmatprep.subr.bf16.mxu0 %v724_v0 }
  0x6b   :  { %520 = vmatmul.mubr.bf16.vlgmr.msra.gmra.mrb[0].mxu0 %v81_v11 }
  0x6c   :  { %559 = vmatprep.mubr.msk.bf16.mxu0 %vm725_vm0, %v724_v0  ;;  %544 = vmatpush3.bf16.msra.mxu0 %v588_v18 }
  0x6d   :  { %545 = vmatprep.subr.bf16.mxu0 %v724_v0 }
  0x70   :  { %546 = vmatpush3.bf16.msra.mxu0 %v589_v19 }
  0x71   :  { %547 = vmatprep.subr.bf16.mxu0 %v724_v0 }
  0x74   :  { %548 = vmatpush3.bf16.msra.mxu0 %v590_v32 }
  0x75   :  { %549 = vmatprep.subr.bf16.mxu0 %v724_v0 }
  0x78   :  { %550 = vmatpush3.bf16.msra.mxu0 %v591_v33 }
  0x79   :  { %551 = vmatprep.subr.bf16.mxu0 %v724_v0 }
  0x7c   :  { %552 = vmatpush3.bf16.msra.mxu0 %v592_v34 }
  0x7d   :  { %553 = vmatprep.subr.bf16.mxu0 %v724_v0 }
  0x80   :  { %554 = vmatpush3.bf16.msra.mxu0 %v593_v35 }
  0x81   :  { %555 = vmatprep.subr.bf16.mxu0 %v724_v0 }
  0x84   :  { %556 = vmatpush3.bf16.msra.mxu0 %v594_v36 }
  0x85   :  { %557 = vmatprep.subr.bf16.mxu0 %v724_v0 }
  0x88   :  { %558 = vmatpush3.bf16.msra.mxu0 %v595_v37 }
 0x13e   :  { %v187_v21 = vpop.f32.mrb[0].mxu0 }
 0x13f   :  { %v188_v22 = vadd.f32 %v447_v20, %v187_v21  ;;  %v521_v23 = vpop.f32.mrb[1].mxu0 }
 0x140   :  { %v190_v24 = vpop.f32.mrb[2].mxu0 }
 0x141   :  { %v194_v25 = vmin.f32 %v188_v22, 0.0  ;;  %v522_v26 = vpop.f32.mrb[3].mxu0  ;;  %vm193_vm1 = vcmp.gt.f32.partialorder %v188_v22, 0.0 }
 0x143   :  { %v195_v27 = vmul.f32 1.442695, %v194_v25 }
 0x145   :  { %596 = vpow2.f32 %v195_v27 }
 0x14f   :  { %v597_v28 = vpop.eup %596 }
 0x150   :  { %v456_v29 = vadd.f32 -1.0, %v597_v28 }
 0x152   :  { %v198_v30 = vsel %vm193_vm1, %v188_v22, %v456_v29 }
 0x153   :  { %v199_v31 = vpack.c.bf16 %v198_v30, %v198_v30 }
 0x155   :  { %540 = vmatmul.mubr.bf16.vlgmr.msra.gmra.mrb[0].mxu1 %v199_v31 }
 0x228   :  { %v305_v39 = vpop.f32.mrb[0].mxu1 }
 0x229   :  { %v306_v40 = vadd.f32 %v457_v38, %v305_v39  ;;  %v541_v41 = vpop.f32.mrb[1].mxu1 }
 0x22a   :  { %v308_v42 = vpop.f32.mrb[2].mxu1 }
 0x22b   :  { %v312_v43 = vmin.f32 %v306_v40, 0.0  ;;  %v542_v44 = vpop.f32.mrb[3].mxu1  ;;  %vm311_vm2 = vcmp.gt.f32.partialorder %v306_v40, 0.0 }
 0x22d   :  { %v313_v45 = vmul.f32 1.442695, %v312_v43 }
 0x22f   :  { %598 = vpow2.f32 %v313_v45 }
 0x239   :  { %v599_v46 = vpop.eup %598 }
 0x23a   :  { %v466_v47 = vadd.f32 -1.0, %v599_v46 }
 0x23c   :  { %v316_v48 = vsel %vm311_vm2, %v306_v40, %v466_v47 }
 0x23d   :  { %v317_v49 = vpack.c.bf16 %v316_v48, %v316_v48 }
 0x23f   :  { %560 = vmatmul.mubr.bf16.vlgmr.msra.gmra.mrb[4].mxu0 %v317_v49 }
 0x312   :  { %v423_v51 = vpop.f32.mrb[4].mxu0 }
 0x313   :  { %v424_v52 = vadd.f32 %v467_v50, %v423_v51  ;;  %v561_v53 = vpop.f32.mrb[5].mxu0 }
 0x314   :  { %v426_v54 = vpop.f32.mrb[6].mxu0 }
 0x315   :  { %429 = vst [vmem:[#allocation10] sm:$0xff] %v424_v52  ;;  %v562_v55 = vpop.f32.mrb[7].mxu0 }
 0x316   :  { %699 = shalt.err (!%p696_p8)
}
 0x317   :  { %s700_s6 = scalar_lea.hbm %s882_s7, 128 }
 0x318   :  { %p701_p9 = scmp.ne.s32.totalorder %s882_s7, %s700_s6  ;;  %p704_p10 = scmp.lt.u32.totalorder %s700_s6, %s882_s7 }
 0x31a   :  { %p706_p11 = pnand %p704_p10, %p701_p9 }
 0x31c   :  { %709 = shalt.err (!%p706_p11)
}
 0x31d   :  { %439 = dma.vmem_to_hbm [thread:$0]  %s437_s4, 128, %s882_s7, [#allocation4]  }
 0x31e   :  { %716 = dma.done.wait [#allocation4], 128  }
 0x31f   :  { %717 = vsyncadd [#allocation4], 4294967168 }
 0x320   :  { %443 = vsyncpa [#allocation3], 1 }
 0x321   :  { %444 = vsyncpa [#allocation6], 1 }
 0x322   :  { %445 = vsyncpa [#allocation9], 1 }
 0x323   :  { %446 = vsyncpa [#allocation4], 1 }

// kernel: tpu_custom_call.1
= control target key start
LH: loop header
LB: loop body
LE: loop exit
PB: predicated region body
PF: predicated region fallthrough
CT: control target
= control target key end

     0   :  { %12 = vsyncpa [#allocation3], 0  ;;  %s875_s0 = inlined_call_operand.hbm [shape: bf16[8,128], index: 0, kind: input, shape index: {}]   ;;  %s876_s1 = inlined_call_operand.hbm [shape: bf16[128,128], index: 1, kind: input, shape index: {}]   ;;  %s877_s2 = inlined_call_operand.vmem [shape: f32[1,128], index: 2, kind: input, shape index: {}]   ;;  %s878_s3 = inlined_call_operand.hbm [shape: bf16[128,128], index: 3, kind: input, shape index: {}]   ;;  %s879_s4 = inlined_call_operand.vmem [shape: f32[1,128], index: 4, kind: input, shape index: {}]   ;;  %s880_s5 = inlined_call_operand.hbm [shape: bf16[128,128], index: 5, kind: input, shape index: {}]   ;;  %s881_s6 = inlined_call_operand.vmem [shape: f32[1,128], index: 6, kind: input, shape index: {}]   ;;  %s882_s7 = inlined_call_operand.hbm [shape: f32[8,128], index: 7, kind: output, shape index: {}]  }
   0x1   :  { %13 = vsyncpa [#allocation6], 0 }
   0x2   :  { %14 = vsyncpa [#allocation9], 0 }
   0x3   :  { %15 = vsyncpa [#allocation4], 0  ;;  %s718_s24 = smov [#allocation5]   ;;  %s600_s28 = scalar_lea.hbm %s876_s1, 1024 }
   0x4   :  { %s31_s25 = sshll.u32 %s718_s24, 4  ;;  %p601_p0 = scmp.ne.s32.totalorder %s876_s1, %s600_s28  ;;  %s32_s25 = int_to_ptr.vmem [resolvable:$true] %s31_s25 }
   0x5   :  { %p604_p1 = scmp.lt.u32.totalorder %s600_s28, %s876_s1 }
   0x7   :  { %p606_p2 = pnand %p604_p1, %p601_p0 }
   0x9   :  { %609 = shalt.err (!%p606_p2)
}
   0xa   :  { %s610_s10 = scalar_lea.vmem %s32_s25, 1024  ;;  %p615_p4 = scmp.lt.s32.totalorder %s32_s25, %s32_s25 }
   0xb   :  { %p611_p3 = scmp.ne.s32.totalorder %s32_s25, %s610_s10  ;;  %p616_p5 = scmp.lt.s32.totalorder %s610_s10, %s610_s10 }
   0xd   :  { %p617_p6 = por %p616_p5, %p615_p4 }
   0xf   :  { %p618_p7 = pnand %p617_p6, %p611_p3 }
  0x11   :  { %621 = shalt.err (!%p618_p7)
}
  0x12   :  { %s719_s11 = smov 64   ;;  %s720_s12 = smov 4  }
  0x13   :  { %37 = dma.hbm_to_vmem [thread:$0]  %s876_s1, 1024, %s32_s25, [#allocation6], %s719_s11, %s719_s11, %s720_s12  }
  0x14   :  { %s721_s15 = smov [#allocation2]   ;;  %s722_s17 = smov [#allocation7]  }
  0x15   :  { %s22_s16 = sshll.u32 %s721_s15, 4  ;;  %s45_s18 = sshll.u32 %s722_s17, 4  ;;  %s23_s16 = int_to_ptr.vmem [resolvable:$true] %s22_s16  ;;  %s46_s18 = int_to_ptr.vmem [resolvable:$true] %s45_s18 }
  0x16   :  { %s622_s21 = scalar_lea.hbm %s875_s0, 64 }
  0x17   :  { %p623_p8 = scmp.ne.s32.totalorder %s875_s0, %s622_s21  ;;  %p626_p9 = scmp.lt.u32.totalorder %s622_s21, %s875_s0 }
  0x19   :  { %p628_p10 = pnand %p626_p9, %p623_p8 }
  0x1b   :  { %631 = shalt.err (!%p628_p10)
}
  0x1c   :  { %s632_s1 = scalar_lea.vmem %s23_s16, 64  ;;  %p637_p12 = scmp.lt.s32.totalorder %s23_s16, %s23_s16 }
  0x1d   :  { %p633_p11 = scmp.ne.s32.totalorder %s23_s16, %s632_s1  ;;  %p638_p13 = scmp.lt.s32.totalorder %s632_s1, %s632_s1 }
  0x1f   :  { %p639_p0 = por %p638_p13, %p637_p12 }
  0x21   :  { %p640_p1 = pnand %p639_p0, %p633_p11 }
  0x23   :  { %643 = shalt.err (!%p640_p1)
}
  0x24   :  { %25 = dma.hbm_to_vmem [thread:$0]  %s875_s0, 64, %s23_s16, [#allocation3]  }
  0x25   :  { %s644_s30 = scalar_lea.hbm %s878_s3, 1024 }
  0x26   :  { %p645_p2 = scmp.ne.s32.totalorder %s878_s3, %s644_s30  ;;  %p648_p3 = scmp.lt.u32.totalorder %s644_s30, %s878_s3 }
  0x28   :  { %p650_p4 = pnand %p648_p3, %p645_p2 }
  0x2a   :  { %653 = shalt.err (!%p650_p4)
}
  0x2b   :  { %s654_s14 = scalar_lea.vmem %s46_s18, 1024  ;;  %p659_p6 = scmp.lt.s32.totalorder %s46_s18, %s46_s18 }
  0x2c   :  { %p655_p5 = scmp.ne.s32.totalorder %s46_s18, %s654_s14  ;;  %p660_p7 = scmp.lt.s32.totalorder %s654_s14, %s654_s14 }
  0x2e   :  { %p661_p8 = por %p660_p7, %p659_p6 }
  0x30   :  { %p662_p9 = pnand %p661_p8, %p655_p5 }
  0x32   :  { %665 = shalt.err (!%p662_p9)
}
  0x33   :  { %51 = dma.hbm_to_vmem [thread:$0]  %s878_s3, 1024, %s46_s18, [#allocation6], %s719_s11, %s719_s11, %s720_s12  }
  0x34   :  { %s723_s16 = smov [#allocation8]   ;;  %s666_s21 = scalar_lea.hbm %s880_s5, 1024 }
  0x35   :  { %s59_s17 = sshll.u32 %s723_s16, 4  ;;  %p667_p10 = scmp.ne.s32.totalorder %s880_s5, %s666_s21  ;;  %s60_s17 = int_to_ptr.vmem [resolvable:$true] %s59_s17 }
  0x36   :  { %p670_p11 = scmp.lt.u32.totalorder %s666_s21, %s880_s5 }
  0x38   :  { %p672_p12 = pnand %p670_p11, %p667_p10 }
  0x3a   :  { %675 = shalt.err (!%p672_p12)
}
  0x3b   :  { %s676_s1 = scalar_lea.vmem %s60_s17, 1024  ;;  %p681_p0 = scmp.lt.s32.totalorder %s60_s17, %s60_s17 }
  0x3c   :  { %p677_p13 = scmp.ne.s32.totalorder %s60_s17, %s676_s1  ;;  %p682_p1 = scmp.lt.s32.totalorder %s676_s1, %s676_s1 }
  0x3e   :  { %p683_p2 = por %p682_p1, %p681_p0 }
  0x40   :  { %p684_p3 = pnand %p683_p2, %p677_p13 }
  0x42   :  { %687 = shalt.err (!%p684_p3)
}
  0x43   :  { %65 = dma.hbm_to_vmem [thread:$0]  %s880_s5, 1024, %s60_s17, [#allocation9], %s719_s11, %s719_s11, %s720_s12  }
  0x44   :  { %710 = dma.done.wait [#allocation3], 64  }
  0x45   :  { %711 = vsyncadd [#allocation3], 4294967232 }
  0x46   :  { %712 = dma.done.wait [#allocation6], 2048  }
  0x47   :  { %713 = vsyncadd [#allocation6], 4294965248 }
  0x48   :  { %714 = dma.done.wait [#allocation9], 1024  }
  0x49   :  { %715 = vsyncadd [#allocation9], 4294966272  ;;  %v724_v0 = vmov 0.0   ;;  %vm725_vm0 = vmmov 0   ;;  %v572_v1 = vld [vmem:[#allocation5] sm:$0xff]   ;;  %v573_v2 = vld [vmem:[#allocation5 + $0x8] sm:$0xff]  }
  0x4a   :  { %503 = vmatprep.subr.bf16.mxu0 %v724_v0  ;;  %519 = vmatprep.mubr.msk.bf16.mxu0 %vm725_vm0, %v724_v0  ;;  %v574_v3 = vld [vmem:[#allocation5 + $0x10] sm:$0xff]   ;;  %v580_v4 = vld [vmem:[#allocation7] sm:$0xff]   ;;  %v575_v5 = vld [vmem:[#allocation5 + $0x18] sm:$0xff]   ;;  %s726_s28 = smov [#allocation10]  }
  0x4b   :  { %523 = vmatprep.subr.bf16.mxu1 %v724_v0  ;;  %539 = vmatprep.mubr.msk.bf16.mxu1 %vm725_vm0, %v724_v0  ;;  %v581_v6 = vld [vmem:[#allocation7 + $0x8] sm:$0xff]   ;;  %v576_v7 = vld [vmem:[#allocation5 + $0x20] sm:$0xff]   ;;  %v578_v9 = vld [vmem:[#allocation5 + $0x30] sm:$0xff]  }
  0x4c   :  { %504 = vmatpush3.bf16.msra.mxu0 %v572_v1  ;;  %524 = vmatpush3.bf16.msra.mxu1 %v580_v4  ;;  %v577_v8 = vld [vmem:[#allocation5 + $0x28] sm:$0xff]   ;;  %v579_v10 = vld [vmem:[#allocation5 + $0x38] sm:$0xff]   ;;  %v582_v12 = vld [vmem:[#allocation7 + $0x10] sm:$0xff]  }
  0x4d   :  { %505 = vmatprep.subr.bf16.mxu0 %v724_v0  ;;  %525 = vmatprep.subr.bf16.mxu1 %v724_v0  ;;  %v81_v11 = vld [vmem:[#allocation2] sm:$0xf]  ;;  %v584_v14 = vld [vmem:[#allocation7 + $0x20] sm:$0xff]   ;;  %v585_v15 = vld [vmem:[#allocation7 + $0x28] sm:$0xff]  }
  0x4e   :  { %v583_v13 = vld [vmem:[#allocation7 + $0x18] sm:$0xff]   ;;  %v586_v16 = vld [vmem:[#allocation7 + $0x30] sm:$0xff]   ;;  %v588_v18 = vld [vmem:[#allocation8] sm:$0xff]  }
  0x4f   :  { %v587_v17 = vld [vmem:[#allocation7 + $0x38] sm:$0xff]   ;;  %v589_v19 = vld [vmem:[#allocation8 + $0x8] sm:$0xff]   ;;  %v590_v32 = vld [vmem:[#allocation8 + $0x10] sm:$0xff]  }
  0x50   :  { %506 = vmatpush3.bf16.msra.mxu0 %v573_v2  ;;  %526 = vmatpush3.bf16.msra.mxu1 %v581_v6  ;;  %v447_v20 = vld [vmem:[%s877_s2] ss:$0 sm:$0xff]  ;;  %v592_v34 = vld [vmem:[#allocation8 + $0x20] sm:$0xff]   ;;  %v593_v35 = vld [vmem:[#allocation8 + $0x28] sm:$0xff]  }
  0x51   :  { %507 = vmatprep.subr.bf16.mxu0 %v724_v0  ;;  %527 = vmatprep.subr.bf16.mxu1 %v724_v0  ;;  %v591_v33 = vld [vmem:[#allocation8 + $0x18] sm:$0xff]   ;;  %v594_v36 = vld [vmem:[#allocation8 + $0x30] sm:$0xff]  }
  0x52   :  { %v595_v37 = vld [vmem:[#allocation8 + $0x38] sm:$0xff]  }
  0x53   :  { %v457_v38 = vld [vmem:[%s879_s4] ss:$0 sm:$0xff]  ;;  %s436_s4 = sshll.u32 %s726_s28, 4  ;;  %s437_s4 = int_to_ptr.vmem [resolvable:$true] %s436_s4 }
  0x54   :  { %508 = vmatpush3.bf16.msra.mxu0 %v574_v3  ;;  %528 = vmatpush3.bf16.msra.mxu1 %v582_v12  ;;  %v467_v50 = vld [vmem:[%s881_s6] ss:$0 sm:$0xff]  ;;  %s688_s29 = scalar_lea.vmem %s437_s4, 128  ;;  %p693_p5 = scmp.lt.s32.totalorder %s437_s4, %s437_s4 }
  0x55   :  { %509 = vmatprep.subr.bf16.mxu0 %v724_v0  ;;  %529 = vmatprep.subr.bf16.mxu1 %v724_v0  ;;  %p689_p4 = scmp.ne.s32.totalorder %s437_s4, %s688_s29  ;;  %p694_p6 = scmp.lt.s32.totalorder %s688_s29, %s688_s29 }
  0x57   :  { %p695_p7 = por %p694_p6, %p693_p5 }
  0x58   :  { %510 = vmatpush3.bf16.msra.mxu0 %v575_v5  ;;  %530 = vmatpush3.bf16.msra.mxu1 %v583_v13 }
  0x59   :  { %511 = vmatprep.subr.bf16.mxu0 %v724_v0  ;;  %531 = vmatprep.subr.bf16.mxu1 %v724_v0  ;;  %p696_p8 = pnand %p695_p7, %p689_p4 }
  0x5c   :  { %512 = vmatpush3.bf16.msra.mxu0 %v576_v7  ;;  %532 = vmatpush3.bf16.msra.mxu1 %v584_v14 }
  0x5d   :  { %513 = vmatprep.subr.bf16.mxu0 %v724_v0  ;;  %533 = vmatprep.subr.bf16.mxu1 %v724_v0 }
  0x60   :  { %514 = vmatpush3.bf16.msra.mxu0 %v577_v8  ;;  %534 = vmatpush3.bf16.msra.mxu1 %v585_v15 }
  0x61   :  { %515 = vmatprep.subr.bf16.mxu0 %v724_v0  ;;  %535 = vmatprep.subr.bf16.mxu1 %v724_v0 }
  0x64   :  { %516 = vmatpush3.bf16.msra.mxu0 %v578_v9  ;;  %536 = vmatpush3.bf16.msra.mxu1 %v586_v16 }
  0x65   :  { %517 = vmatprep.subr.bf16.mxu0 %v724_v0  ;;  %537 = vmatprep.subr.bf16.mxu1 %v724_v0 }
  0x68   :  { %518 = vmatpush3.bf16.msra.mxu0 %v579_v10  ;;  %538 = vmatpush3.bf16.msra.mxu1 %v587_v17 }
  0x69   :  { %543 = vmatprep.subr.bf16.mxu0 %v724_v0 }
  0x6b   :  { %520 = vmatmul.mubr.bf16.vlgmr.msra.gmra.mrb[0].mxu0 %v81_v11 }
  0x6c   :  { %559 = vmatprep.mubr.msk.bf16.mxu0 %vm725_vm0, %v724_v0  ;;  %544 = vmatpush3.bf16.msra.mxu0 %v588_v18 }
  0x6d   :  { %545 = vmatprep.subr.bf16.mxu0 %v724_v0 }
  0x70   :  { %546 = vmatpush3.bf16.msra.mxu0 %v589_v19 }
  0x71   :  { %547 = vmatprep.subr.bf16.mxu0 %v724_v0 }
  0x74   :  { %548 = vmatpush3.bf16.msra.mxu0 %v590_v32 }
  0x75   :  { %549 = vmatprep.subr.bf16.mxu0 %v724_v0 }
  0x78   :  { %550 = vmatpush3.bf16.msra.mxu0 %v591_v33 }
  0x79   :  { %551 = vmatprep.subr.bf16.mxu0 %v724_v0 }
  0x7c   :  { %552 = vmatpush3.bf16.msra.mxu0 %v592_v34 }
  0x7d   :  { %553 = vmatprep.subr.bf16.mxu0 %v724_v0 }
  0x80   :  { %554 = vmatpush3.bf16.msra.mxu0 %v593_v35 }
  0x81   :  { %555 = vmatprep.subr.bf16.mxu0 %v724_v0 }
  0x84   :  { %556 = vmatpush3.bf16.msra.mxu0 %v594_v36 }
  0x85   :  { %557 = vmatprep.subr.bf16.mxu0 %v724_v0 }
  0x88   :  { %558 = vmatpush3.bf16.msra.mxu0 %v595_v37 }
 0x13e   :  { %v187_v21 = vpop.f32.mrb[0].mxu0 }
 0x13f   :  { %v188_v22 = vadd.f32 %v447_v20, %v187_v21  ;;  %v521_v23 = vpop.f32.mrb[1].mxu0 }
 0x140   :  { %v190_v24 = vpop.f32.mrb[2].mxu0 }
 0x141   :  { %v194_v25 = vmin.f32 %v188_v22, 0.0  ;;  %v522_v26 = vpop.f32.mrb[3].mxu0  ;;  %vm193_vm1 = vcmp.gt.f32.partialorder %v188_v22, 0.0 }
 0x143   :  { %v195_v27 = vmul.f32 1.442695, %v194_v25 }
 0x145   :  { %596 = vpow2.f32 %v195_v27 }
 0x14f   :  { %v597_v28 = vpop.eup %596 }
 0x150   :  { %v456_v29 = vadd.f32 -1.0, %v597_v28 }
 0x152   :  { %v198_v30 = vsel %vm193_vm1, %v188_v22, %v456_v29 }
 0x153   :  { %v199_v31 = vpack.c.bf16 %v198_v30, %v198_v30 }
 0x155   :  { %540 = vmatmul.mubr.bf16.vlgmr.msra.gmra.mrb[0].mxu1 %v199_v31 }
 0x228   :  { %v305_v39 = vpop.f32.mrb[0].mxu1 }
 0x229   :  { %v306_v40 = vadd.f32 %v457_v38, %v305_v39  ;;  %v541_v41 = vpop.f32.mrb[1].mxu1 }
 0x22a   :  { %v308_v42 = vpop.f32.mrb[2].mxu1 }
 0x22b   :  { %v312_v43 = vmin.f32 %v306_v40, 0.0  ;;  %v542_v44 = vpop.f32.mrb[3].mxu1  ;;  %vm311_vm2 = vcmp.gt.f32.partialorder %v306_v40, 0.0 }
 0x22d   :  { %v313_v45 = vmul.f32 1.442695, %v312_v43 }
 0x22f   :  { %598 = vpow2.f32 %v313_v45 }
 0x239   :  { %v599_v46 = vpop.eup %598 }
 0x23a   :  { %v466_v47 = vadd.f32 -1.0, %v599_v46 }
 0x23c   :  { %v316_v48 = vsel %vm311_vm2, %v306_v40, %v466_v47 }
 0x23d   :  { %v317_v49 = vpack.c.bf16 %v316_v48, %v316_v48 }
 0x23f   :  { %560 = vmatmul.mubr.bf16.vlgmr.msra.gmra.mrb[4].mxu0 %v317_v49 }
 0x312   :  { %v423_v51 = vpop.f32.mrb[4].mxu0 }
 0x313   :  { %v424_v52 = vadd.f32 %v467_v50, %v423_v51  ;;  %v561_v53 = vpop.f32.mrb[5].mxu0 }
 0x314   :  { %v426_v54 = vpop.f32.mrb[6].mxu0 }
 0x315   :  { %429 = vst [vmem:[#allocation10] sm:$0xff] %v424_v52  ;;  %v562_v55 = vpop.f32.mrb[7].mxu0 }
 0x316   :  { %699 = shalt.err (!%p696_p8)
}
 0x317   :  { %s700_s6 = scalar_lea.hbm %s882_s7, 128 }
 0x318   :  { %p701_p9 = scmp.ne.s32.totalorder %s882_s7, %s700_s6  ;;  %p704_p10 = scmp.lt.u32.totalorder %s700_s6, %s882_s7 }
 0x31a   :  { %p706_p11 = pnand %p704_p10, %p701_p9 }
 0x31c   :  { %709 = shalt.err (!%p706_p11)
}
 0x31d   :  { %439 = dma.vmem_to_hbm [thread:$0]  %s437_s4, 128, %s882_s7, [#allocation4]  }
 0x31e   :  { %716 = dma.done.wait [#allocation4], 128  }
 0x31f   :  { %717 = vsyncadd [#allocation4], 4294967168 }
 0x320   :  { %443 = vsyncpa [#allocation3], 1 }
 0x321   :  { %444 = vsyncpa [#allocation6], 1 }
 0x322   :  { %445 = vsyncpa [#allocation9], 1 }
 0x323   :  { %446 = vsyncpa [#allocation4], 1 }

</bundles_post_ra>
